<compile_context>
chip_gen: v7x
topology: tpu7x:2x2x1
jax: 0.10.0
libtpu: 0.0.40
codegen_flags: <defaults>
</compile_context>

<pallas_src>
import functools

import numpy as np
import jax
import jax.numpy as jnp
from jax.experimental import pallas as pl
from jax.experimental.pallas import tpu as pltpu


def _ceil_div(a, b):
    return -(-a // b)


def _label_smoothing_kernel(*refs, neg_base, neg_delta, ignore, has_weights,
                            compute_acc, sum_w, num_classes, class_tile,
                            multi_c, mask_tail):
    # ---- unpack refs (inputs, outputs, then scratch) ----
    idx = 0
    pred_ref = refs[idx]; idx += 1
    tgt_ref = refs[idx]; idx += 1
    w_ref = None
    if has_weights:
        w_ref = refs[idx]; idx += 1
    loss_ref = refs[idx]; idx += 1
    acc_ref = None
    if compute_acc:
        acc_ref = refs[idx]; idx += 1
    if multi_c:
        m_sc = refs[idx]; idx += 1
        l_sc = refs[idx]; idx += 1
        wpt_sc = refs[idx]; idx += 1
        swp_sc = None
        if neg_base != 0.0:
            swp_sc = refs[idx]; idx += 1
        wt_sc = None
        if has_weights:
            wt_sc = refs[idx]; idx += 1
        amax_sc = None
        if compute_acc:
            amax_sc = refs[idx]; idx += 1

    pred = pred_ref[...].astype(jnp.float32)          # (TN, TC) f32 working copy
    tgt = tgt_ref[...]                                 # (TN, 1) int32
    tn, tc = pred.shape

    col_local = jax.lax.broadcasted_iota(jnp.int32, pred.shape, 1)

    if has_weights:
        w = w_ref[...].astype(jnp.float32)             # (1, TC)
        wpred = pred * w
    else:
        w = None
        wpred = pred

    # ------------------------------------------------------------------
    # Single class block: everything stays in registers, no scratch.
    # ------------------------------------------------------------------
    if not multi_c:
        col = col_local
        m = jnp.max(pred, axis=-1, keepdims=True)
        lse = m + jnp.log(jnp.sum(jnp.exp(pred - m), axis=-1, keepdims=True))

        is_tgt = col == tgt
        wpt = jnp.sum(jnp.where(is_tgt, wpred, 0.0), axis=-1, keepdims=True)
        if has_weights:
            wt = jnp.sum(jnp.where(is_tgt, w, 0.0), axis=-1, keepdims=True)
            tgt_wlogp = wpt - wt * lse                 # (w * logp)[tgt]
        else:
            tgt_wlogp = wpt - lse                      # logp[tgt]

        loss = jnp.float32(neg_delta) * tgt_wlogp
        if neg_base != 0.0:                            # smoothing == 0 -> skip
            sum_wlogp = (jnp.sum(wpred, axis=-1, keepdims=True)
                         - jnp.float32(sum_w) * lse)   # sum(w * logp)
            loss = loss + jnp.float32(neg_base) * sum_wlogp
        if ignore is not None:
            # Rows with target == ignore use the one-hot-at-ignore distribution;
            # since tgt == ignore there, that is simply -(w*logp)[tgt].
            loss = jnp.where(tgt == ignore, -tgt_wlogp, loss)
        loss_ref[...] = loss

        if compute_acc:
            # argmax(logp) == argmax(pred); sentinel = block width (no collision).
            amax = jnp.min(jnp.where(pred == m, col, tc), axis=-1, keepdims=True)
            acc_ref[...] = (amax == tgt).astype(jnp.int32)
        return

    # ------------------------------------------------------------------
    # Multiple class blocks: online-LSE accumulation in VMEM scratch.
    # ------------------------------------------------------------------
    k = pl.program_id(1)
    col = col_local + k * class_tile                   # global class index

    @pl.when(k == 0)
    def _init():
        m_sc[...] = jnp.full_like(m_sc, -jnp.inf)
        l_sc[...] = jnp.zeros_like(l_sc)
        wpt_sc[...] = jnp.zeros_like(wpt_sc)
        if swp_sc is not None:
            swp_sc[...] = jnp.zeros_like(swp_sc)
        if wt_sc is not None:
            wt_sc[...] = jnp.zeros_like(wt_sc)
        if amax_sc is not None:
            amax_sc[...] = jnp.zeros_like(amax_sc)

    if mask_tail:
        valid = col < num_classes
        pred_m = jnp.where(valid, pred, -jnp.inf)      # masked cols never win / exp->0
    else:
        valid = None
        pred_m = pred

    m_old = m_sc[...]
    blk_max = jnp.max(pred_m, axis=-1, keepdims=True)
    m_new = jnp.maximum(m_old, blk_max)

    if compute_acc:
        blk_arg = jnp.min(jnp.where(pred_m == blk_max, col_local, tc),
                          axis=-1, keepdims=True) + k * class_tile
        # strict > keeps first-index tie-break across class blocks
        amax_sc[...] = jnp.where(blk_max > m_old, blk_arg, amax_sc[...])

    l_sc[...] = (l_sc[...] * jnp.exp(m_old - m_new)
                 + jnp.sum(jnp.exp(pred_m - m_new), axis=-1, keepdims=True))
    m_sc[...] = m_new

    is_tgt = col == tgt                                # garbage cols never match
    wpt_sc[...] += jnp.sum(jnp.where(is_tgt, wpred, 0.0), axis=-1, keepdims=True)
    if wt_sc is not None:
        wt_sc[...] += jnp.sum(jnp.where(is_tgt, w, 0.0), axis=-1, keepdims=True)
    if swp_sc is not None:
        swp_blk = jnp.where(valid, wpred, 0.0) if mask_tail else wpred
        swp_sc[...] += jnp.sum(swp_blk, axis=-1, keepdims=True)

    @pl.when(k == pl.num_programs(1) - 1)
    def _finalize():
        lse = m_sc[...] + jnp.log(l_sc[...])
        wpt = wpt_sc[...]
        if wt_sc is not None:
            tgt_wlogp = wpt - wt_sc[...] * lse
        else:
            tgt_wlogp = wpt - lse
        loss = jnp.float32(neg_delta) * tgt_wlogp
        if swp_sc is not None:
            sum_wlogp = swp_sc[...] - jnp.float32(sum_w) * lse
            loss = loss + jnp.float32(neg_base) * sum_wlogp
        if ignore is not None:
            loss = jnp.where(tgt == ignore, -tgt_wlogp, loss)
        loss_ref[...] = loss
        if compute_acc:
            acc_ref[...] = (amax_sc[...] == tgt).astype(jnp.int32)


def label_smoothing_loss(pred, target, *, classes, smoothing=0.0,
                         weights=None, ignore=None, compute_acc=False,
                         row_tile=None, class_tile=None, vmem_limit_bytes=None):
    """pred: [N, C] float (any dtype), target: [N] int.
    Returns losses [N] f32 (and accs [N] bool if compute_acc)."""
    N, C = pred.shape
    confidence = 1.0 - smoothing
    base = smoothing / (classes - 1) if classes > 1 else 0.0
    neg_base = float(-base)
    neg_delta = float(base - confidence)      # == -(confidence - base)
    has_weights = weights is not None

    itemsize = jnp.dtype(pred.dtype).itemsize

    # ---- per-generation VMEM budgets (v7x has only 64 MiB physical VMEM) ----
    try:
        vmem_cap = int(pltpu.get_tpu_info().vmem_capacity_bytes)
    except Exception:
        vmem_cap = 64 * 1024 * 1024
    if vmem_cap <= 64 * 1024 * 1024:
        budget = 16 * 1024 * 1024
        if vmem_limit_bytes is None:
            vmem_limit_bytes = 48 * 1024 * 1024
    else:
        budget = 24 * 1024 * 1024
        if vmem_limit_bytes is None:
            vmem_limit_bytes = 64 * 1024 * 1024

    # ---- class-dim tiling (online-LSE split for vocab-scale C) ----
    per_elem = 2 * itemsize + 16          # double-buffered native tile + f32 temps
    if class_tile is None:
        max_ct = budget // (256 * per_elem)      # keep >= ~256 rows per step
        if C <= max(128, max_ct):
            class_tile = C
        else:
            class_tile = max(128, (max_ct // 128) * 128)
    else:
        class_tile = min(class_tile, C)
        if class_tile != C:
            class_tile = max(128, (class_tile // 128) * 128)   # lane-legal
    num_class_tiles = _ceil_div(C, class_tile)
    multi_c = num_class_tiles > 1
    mask_tail = multi_c and (C % class_tile != 0)

    # (rows, 1) VMEM blocks pad lanes to 128 -> ~512 B per row per buffer.
    n_scratch = 0
    if multi_c:
        n_scratch = 3 + int(neg_base != 0.0) + int(has_weights) + int(compute_acc)
    per_row_overhead = (2 * 512                       # target block (2 buffers)
                        + 2 * 512                     # loss block (2 buffers)
                        + (2 * 512 if compute_acc else 0)
                        + 512 * n_scratch)

    # ---- row tiling ----
    if row_tile is None:
        rt = budget // (class_tile * per_elem + per_row_overhead)
        row_tile = int(min(8192, max(8, rt)))
        # Guarantee >= 2 (prefer 4) row tiles so the "parallel" axis actually
        # shards across both v7x TensorCores.
        if N >= 32:
            row_tile = min(row_tile, _ceil_div(N, 4))
        elif N >= 16:
            row_tile = min(row_tile, _ceil_div(N, 2))
    # Legalize: block row dim must be a multiple of 8 or the full extent N.
    if N < 8:
        row_tile = N
    else:
        row_tile = max(8, min((row_tile // 8) * 8, (N // 8) * 8))
    num_row_tiles = _ceil_div(N, row_tile)

    tgt2d = target.astype(jnp.int32).reshape(N, 1)

    inputs = [pred, tgt2d]                   # native dtype: no wrapper-side upcast/pad
    in_specs = [
        pl.BlockSpec((row_tile, class_tile), lambda i, k: (i, k)),   # pred tile
        pl.BlockSpec((row_tile, 1), lambda i, k: (i, 0)),            # target tile
    ]
    sum_w = float(C)
    if has_weights:
        w_np = np.asarray(weights, dtype=np.float32).reshape(1, C)
        sum_w = float(w_np.astype(np.float64).sum())
        inputs.append(jnp.asarray(w_np))
        in_specs.append(pl.BlockSpec((1, class_tile), lambda i, k: (0, k)))

    out_shapes = [jax.ShapeDtypeStruct((N, 1), jnp.float32)]
    out_specs = [pl.BlockSpec((row_tile, 1), lambda i, k: (i, 0))]
    if compute_acc:
        out_shapes.append(jax.ShapeDtypeStruct((N, 1), jnp.int32))
        out_specs.append(pl.BlockSpec((row_tile, 1), lambda i, k: (i, 0)))

    scratch_shapes = []
    if multi_c:
        scratch_shapes += [pltpu.VMEM((row_tile, 1), jnp.float32)] * 3   # m, l, wpt
        if neg_base != 0.0:
            scratch_shapes.append(pltpu.VMEM((row_tile, 1), jnp.float32))  # sum(w*pred)
        if has_weights:
            scratch_shapes.append(pltpu.VMEM((row_tile, 1), jnp.float32))  # w[tgt]
        if compute_acc:
            scratch_shapes.append(pltpu.VMEM((row_tile, 1), jnp.int32))    # argmax

    kernel = functools.partial(
        _label_smoothing_kernel,
        neg_base=neg_base, neg_delta=neg_delta, ignore=ignore,
        has_weights=has_weights, compute_acc=compute_acc, sum_w=sum_w,
        num_classes=C, class_tile=class_tile, multi_c=multi_c,
        mask_tail=mask_tail)

    cost = pl.CostEstimate(
        flops=N * C * (8 if has_weights else 6),
        transcendentals=N * C + N,
        bytes_accessed=(N * C * itemsize + N * 4 + N * 4
                        + (C * 4 if has_weights else 0)
                        + (N * 4 if compute_acc else 0)),
    )

    outs = pl.pallas_call(
        kernel,
        out_shape=tuple(out_shapes),
        grid_spec=pltpu.PrefetchScalarGridSpec(
            num_scalar_prefetch=0,
            grid=(num_row_tiles, num_class_tiles),
            in_specs=in_specs,
            out_specs=out_specs,
            scratch_shapes=scratch_shapes,
        ),
        compiler_params=pltpu.CompilerParams(
            dimension_semantics=("parallel", "arbitrary"),
            vmem_limit_bytes=vmem_limit_bytes),
        cost_estimate=cost,
    )(*inputs)

    losses = outs[0].reshape(N)
    if compute_acc:
        return losses, outs[1].reshape(N).astype(jnp.bool_)
    return losses


def _reference(pred, target, *, classes, smoothing, weights, ignore):
    """Pure-JAX reference mirroring the PyTorch forward."""
    pred = pred.astype(jnp.float32)
    logp = jax.nn.log_softmax(pred, axis=-1)
    N, C = pred.shape
    fill = smoothing / (classes - 1) if classes > 1 else 0.0
    true_dist = jnp.full((N, C), fill, dtype=jnp.float32)
    true_dist = true_dist.at[jnp.arange(N), target].set(1.0 - smoothing)
    if ignore is not None:
        mask = (target == ignore)
        ign_dist = jnp.zeros((C,), jnp.float32).at[ignore].set(1.0)
        true_dist = jnp.where(mask[:, None], ign_dist[None, :], true_dist)
    if weights is not None:
        w = jnp.asarray(weights, jnp.float32)
        return jnp.sum(-true_dist * logp * w[None, :], axis=-1)
    return jnp.sum(-true_dist * logp, axis=-1)


if __name__ == "__main__":
    key = jax.random.PRNGKey(0)
    kp, kt, kp2, kt2, kp3, kt3 = jax.random.split(key, 6)

    # --- Test 1: f32, weights + ignore + accuracy (auto tiling, 2 row tiles) ---
    N1, C1 = 16, 32
    smoothing = 0.1
    ignore = 3
    weights = [1.0 + 0.05 * i for i in range(C1)]
    pred1 = jax.random.normal(kp, (N1, C1), dtype=jnp.float32)
    tgt1 = jax.random.randint(kt, (N1,), 0, C1, dtype=jnp.int32)
    tgt1 = tgt1.at[5].set(ignore)     # exercise the ignore path

    losses1, accs1 = label_smoothing_loss(
        pred1, tgt1, classes=C1, smoothing=smoothing,
        weights=weights, ignore=ignore, compute_acc=True)
    jax.block_until_ready((losses1, accs1))
    ref1 = _reference(pred1, tgt1, classes=C1, smoothing=smoothing,
                      weights=weights, ignore=ignore)
    ref_acc1 = jnp.argmax(pred1, axis=-1) == tgt1
    assert jnp.allclose(losses1, ref1, atol=2e-5, rtol=2e-5), (losses1, ref1)
    assert bool(jnp.all(accs1 == ref_acc1))

    # --- Test 2: no weights / no ignore / no acc (specialized kernel) ---
    losses2 = label_smoothing_loss(pred1, tgt1, classes=C1, smoothing=smoothing)
    jax.block_until_ready(losses2)
    ref2 = _reference(pred1, tgt1, classes=C1, smoothing=smoothing,
                      weights=None, ignore=None)
    assert jnp.allclose(losses2, ref2, atol=2e-5, rtol=2e-5)

    # --- Test 3: bf16 streamed natively, ragged last row block (no wrapper pad) ---
    N3, C3 = 40, 128
    pred3 = jax.random.normal(kp2, (N3, C3), dtype=jnp.float32).astype(jnp.bfloat16)
    tgt3 = jax.random.randint(kt2, (N3,), 0, C3, dtype=jnp.int32)
    tgt3 = tgt3.at[7].set(5)
    losses3, accs3 = label_smoothing_loss(
        pred3, tgt3, classes=C3, smoothing=0.05, ignore=5,
        compute_acc=True, row_tile=16)
    jax.block_until_ready((losses3, accs3))
    pred3_f32 = pred3.astype(jnp.float32)
    ref3 = _reference(pred3_f32, tgt3, classes=C3, smoothing=0.05,
                      weights=None, ignore=5)
    ref_acc3 = jnp.argmax(pred3_f32, axis=-1) == tgt3
    assert jnp.allclose(losses3, ref3, atol=1e-4, rtol=1e-4), (losses3, ref3)
    assert bool(jnp.all(accs3 == ref_acc3))

    # --- Test 4: class-dim split (online LSE) with masked ragged class tail ---
    N4, C4 = 24, 320
    weights4 = [0.5 + 0.003 * i for i in range(C4)]
    pred4 = jax.random.normal(kp3, (N4, C4), dtype=jnp.float32)
    tgt4 = jax.random.randint(kt3, (N4,), 0, C4, dtype=jnp.int32)
    tgt4 = tgt4.at[2].set(7)
    losses4, accs4 = label_smoothing_loss(
        pred4, tgt4, classes=C4, smoothing=0.1, weights=weights4,
        ignore=7, compute_acc=True, class_tile=128)
    jax.block_until_ready((losses4, accs4))
    ref4 = _reference(pred4, tgt4, classes=C4, smoothing=0.1,
                      weights=weights4, ignore=7)
    ref_acc4 = jnp.argmax(pred4, axis=-1) == tgt4
    assert jnp.allclose(losses4, ref4, atol=2e-5, rtol=2e-5), (losses4, ref4)
    assert bool(jnp.all(accs4 == ref_acc4))

    # --- Test 5: class-dim split, smoothing=0 (plain CE), no weights/acc ---
    losses5 = label_smoothing_loss(pred4, tgt4, classes=C4, smoothing=0.0,
                                   class_tile=128)
    jax.block_until_ready(losses5)
    ref5 = _reference(pred4, tgt4, classes=C4, smoothing=0.0,
                      weights=None, ignore=None)
    assert jnp.allclose(losses5, ref5, atol=2e-5, rtol=2e-5)

    print("KERNEL_OK")
</pallas_src>

<mosaic_0001>
module attributes {stable_mosaic.version = 11 : i64} {
  func.func @_label_smoothing_kernel(%arg0: i32, %arg1: i32, %arg2: memref<8x32xf32, #tpu.memory_space<vmem>>, %arg3: memref<8x1xi32, #tpu.memory_space<vmem>>, %arg4: memref<1x32xf32, #tpu.memory_space<vmem>>, %arg5: memref<8x1xf32, #tpu.memory_space<vmem>>, %arg6: memref<8x1xi32, #tpu.memory_space<vmem>>) attributes {dimension_semantics = [#tpu.dimension_semantics<parallel>, #tpu.dimension_semantics<arbitrary>], iteration_bounds = array<i64: 2, 1>, scalar_prefetch = 0 : i64, scratch_operands = 0 : i64, tpu.core_type = #tpu.core_type<tc>, window_params = [{transform_indices = @transform_0, window_bounds = array<i64: 8, 32>}, {transform_indices = @transform_1, window_bounds = array<i64: 8, 1>}, {transform_indices = @transform_2, window_bounds = array<i64: 1, 32>}, {transform_indices = @transform_3, window_bounds = array<i64: 8, 1>}, {transform_indices = @transform_4, window_bounds = array<i64: 8, 1>}]} {
    %c0 = arith.constant 0 : index
    %c0_0 = arith.constant 0 : index
    %0 = vector.load %arg2[%c0, %c0_0] : memref<8x32xf32, #tpu.memory_space<vmem>>, vector<8x32xf32>
    %c0_1 = arith.constant 0 : index
    %c0_2 = arith.constant 0 : index
    %1 = vector.load %arg3[%c0_1, %c0_2] : memref<8x1xi32, #tpu.memory_space<vmem>>, vector<8x1xi32>
    %2 = tpu.iota {dimensions = array<i32: 1>} : vector<8x32xi32>
    %c0_3 = arith.constant 0 : index
    %c0_4 = arith.constant 0 : index
    %3 = vector.load %arg4[%c0_3, %c0_4] : memref<1x32xf32, #tpu.memory_space<vmem>>, vector<1x32xf32>
    %4 = vector.broadcast %3 : vector<1x32xf32> to vector<8x32xf32>
    %5 = arith.mulf %0, %4 : vector<8x32xf32>
    %cst = arith.constant dense<0xFF800000> : vector<8xf32>
    %6 = vector.multi_reduction <maximumf>, %0, %cst [1] : vector<8x32xf32> to vector<8xf32>
    %7 = vector.shape_cast %6 : vector<8xf32> to vector<8x1xf32>
    %8 = vector.broadcast %7 : vector<8x1xf32> to vector<8x32xf32>
    %9 = arith.subf %0, %8 : vector<8x32xf32>
    %10 = math.exp %9 : vector<8x32xf32>
    %cst_5 = arith.constant dense<0.000000e+00> : vector<8xf32>
    %11 = vector.multi_reduction <add>, %10, %cst_5 [1] : vector<8x32xf32> to vector<8xf32>
    %12 = vector.shape_cast %11 : vector<8xf32> to vector<8x1xf32>
    %13 = math.log %12 : vector<8x1xf32>
    %14 = arith.addf %7, %13 : vector<8x1xf32>
    %15 = vector.broadcast %1 : vector<8x1xi32> to vector<8x32xi32>
    %16 = arith.cmpi eq, %2, %15 : vector<8x32xi32>
    %cst_6 = arith.constant 0.000000e+00 : f32
    %17 = vector.broadcast %cst_6 : f32 to vector<8x32xf32>
    %18 = arith.select %16, %5, %17 : vector<8x32xi1>, vector<8x32xf32>
    %cst_7 = arith.constant dense<0.000000e+00> : vector<8xf32>
    %19 = vector.multi_reduction <add>, %18, %cst_7 [1] : vector<8x32xf32> to vector<8xf32>
    %20 = vector.shape_cast %19 : vector<8xf32> to vector<8x1xf32>
    %cst_8 = arith.constant 0.000000e+00 : f32
    %21 = vector.shape_cast %3 : vector<1x32xf32> to vector<1x32xf32>
    %22 = vector.broadcast %21 : vector<1x32xf32> to vector<8x32xf32>
    %23 = vector.broadcast %cst_8 : f32 to vector<8x32xf32>
    %24 = arith.select %16, %22, %23 : vector<8x32xi1>, vector<8x32xf32>
    %cst_9 = arith.constant dense<0.000000e+00> : vector<8xf32>
    %25 = vector.multi_reduction <add>, %24, %cst_9 [1] : vector<8x32xf32> to vector<8xf32>
    %26 = vector.shape_cast %25 : vector<8xf32> to vector<8x1xf32>
    %27 = arith.mulf %26, %14 : vector<8x1xf32>
    %28 = arith.subf %20, %27 : vector<8x1xf32>
    %cst_10 = arith.constant -0.896774172 : f32
    %29 = vector.broadcast %cst_10 : f32 to vector<8x1xf32>
    %30 = arith.mulf %29, %28 : vector<8x1xf32>
    %cst_11 = arith.constant dense<0.000000e+00> : vector<8xf32>
    %31 = vector.multi_reduction <add>, %5, %cst_11 [1] : vector<8x32xf32> to vector<8xf32>
    %32 = vector.shape_cast %31 : vector<8xf32> to vector<8x1xf32>
    %cst_12 = arith.constant 5.680000e+01 : f32
    %33 = vector.broadcast %cst_12 : f32 to vector<8x1xf32>
    %34 = arith.mulf %33, %14 : vector<8x1xf32>
    %35 = arith.subf %32, %34 : vector<8x1xf32>
    %cst_13 = arith.constant -0.0032258064 : f32
    %36 = vector.broadcast %cst_13 : f32 to vector<8x1xf32>
    %37 = arith.mulf %36, %35 : vector<8x1xf32>
    %38 = arith.addf %30, %37 : vector<8x1xf32>
    %c3_i32 = arith.constant 3 : i32
    %39 = vector.broadcast %c3_i32 : i32 to vector<8x1xi32>
    %40 = arith.cmpi eq, %1, %39 : vector<8x1xi32>
    %cst_14 = arith.constant 0.000000e+00 : f32
    %41 = vector.broadcast %cst_14 : f32 to vector<8x1xf32>
    %42 = arith.subf %41, %28 : vector<8x1xf32>
    %43 = arith.select %40, %42, %38 : vector<8x1xi1>, vector<8x1xf32>
    %c0_15 = arith.constant 0 : index
    %c0_16 = arith.constant 0 : index
    %44 = vector.load %arg5[%c0_15, %c0_16] : memref<8x1xf32, #tpu.memory_space<vmem>>, vector<8x1xf32>
    tpu.vector_store %arg5[%c0_15, %c0_16], %43 {strides = array<i32>} : memref<8x1xf32, #tpu.memory_space<vmem>>, vector<8x1xf32>,
    %45 = vector.broadcast %7 : vector<8x1xf32> to vector<8x32xf32>
    %46 = arith.cmpf oeq, %0, %45 : vector<8x32xf32>
    %c32_i32 = arith.constant 32 : i32
    %47 = vector.broadcast %c32_i32 : i32 to vector<8x32xi32>
    %48 = arith.select %46, %2, %47 : vector<8x32xi1>, vector<8x32xi32>
    %cst_17 = arith.constant dense<2147483647> : vector<8xi32>
    %49 = vector.multi_reduction <minsi>, %48, %cst_17 [1] : vector<8x32xi32> to vector<8xi32>
    %50 = vector.shape_cast %49 : vector<8xi32> to vector<8x1xi32>
    %51 = arith.cmpi eq, %50, %1 : vector<8x1xi32>
    %52 = arith.extui %51 : vector<8x1xi1> to vector<8x1xi32>
    %c0_18 = arith.constant 0 : index
    %c0_19 = arith.constant 0 : index
    %53 = vector.load %arg6[%c0_18, %c0_19] : memref<8x1xi32, #tpu.memory_space<vmem>>, vector<8x1xi32>
    tpu.vector_store %arg6[%c0_18, %c0_19], %52 {strides = array<i32>} : memref<8x1xi32, #tpu.memory_space<vmem>>, vector<8x1xi32>,
    return
  }
  func.func @transform_0(%arg0: i32, %arg1: i32) -> (i32, i32) {
    %c0_i32 = arith.constant 0 : i32
    return %arg0, %arg1 : i32, i32
  }
  func.func @transform_1(%arg0: i32, %arg1: i32) -> (i32, i32) {
    %c0_i32 = arith.constant 0 : i32
    %c0_i32_0 = arith.constant 0 : i32
    return %arg0, %c0_i32 : i32, i32
  }
  func.func @transform_2(%arg0: i32, %arg1: i32) -> (i32, i32) {
    %c0_i32 = arith.constant 0 : i32
    %c0_i32_0 = arith.constant 0 : i32
    return %c0_i32, %arg1 : i32, i32
  }
  func.func @transform_3(%arg0: i32, %arg1: i32) -> (i32, i32) {
    %c0_i32 = arith.constant 0 : i32
    %c0_i32_0 = arith.constant 0 : i32
    return %arg0, %c0_i32 : i32, i32
  }
  func.func @transform_4(%arg0: i32, %arg1: i32) -> (i32, i32) {
    %c0_i32 = arith.constant 0 : i32
    %c0_i32_0 = arith.constant 0 : i32
    return %arg0, %c0_i32 : i32, i32
  }
}

</mosaic_0001>

<bundles_post_ra>
// kernel: tpu_custom_call.1
= control target key start
LH: loop header
LB: loop body
LE: loop exit
PB: predicated region body
PF: predicated region fallthrough
CT: control target
= control target key end

     0   :  { %s544_s15 = smov 0   ;;  %s546_s16 = smov 0   ;;  %s606_s0 = inlined_call_operand.vmem [shape: f32[16,32], index: 0, kind: input, shape index: {}]   ;;  %s607_s1 = inlined_call_operand.vmem [shape: s32[16,1], index: 1, kind: input, shape index: {}]   ;;  %s608_s2 = inlined_call_operand.vmem [shape: f32[1,32], index: 2, kind: input, shape index: {}]   ;;  %s609_s3 = inlined_call_operand.vmem [shape: f32[16,1], index: 3, kind: output, shape index: {0}]   ;;  %s610_s4 = inlined_call_operand.vmem [shape: s32[16,1], index: 4, kind: output, shape index: {1}]  }
   0x1   :  { %s548_s17 = smov 0  }
   0x2 LB: > { %s27_s18 = sadd.s32 1, %s512_s16  ;;  %p455_p0 = scmp.ge.s32.totalorder %s516_s17, 1  ;;  %s516_s17 = sphi %s548_s17, %s15_s17   ;;  %s512_s16 = sphi %s546_s16, %s612_s16   ;;  %s508_s15 = sphi %s544_s15, %s611_s15  }
   0x3   : > { %p29_p1 = scmp.ge.s32.totalorder %s27_s18, 2  ;;  %p198_p2 = scmp.lt.s32.totalorder %s516_s17, 3 }
   0x5   : > { %s614_s18 = smov (%p29_p1, %s27_s18), 0  ;;  %p199_p3 = pnand %p455_p0, %p198_p2 }
   0x6   : > { %p236_p4 = scmp.lt.s32.totalorder (!%p199_p3), %s508_s15, 1  ;;  %v518_v0 = vmov (!%p199_p3), 0   ;;  %vm270_vm0 = vcmask (!%p199_p3), 261120   ;;  %v260_v4 = vlaneseq (!%p199_p3)  ;;  %v460_v12 = vld [vmem:[%s608_s2] ss:$0 sm:$0xff] (!%p199_p3)  ;;  %vm308_vm5 = vcmask (!%p199_p3), 7168  }
   0x7   : > { %202 = sbr.rel (%p199_p3) target bundleno = 461 (0x1cd), region = 32  ;;  %488 = vset.pattern.permute.xlu1 (!%p199_p3), %v518_v0  ;;  %489 = vset.pattern.permute.xlu0 (!%p199_p3), %v518_v0 }
   0x8   : > { %v261_v5 = vand.u32 (!%p199_p3), 127, %v260_v4 }
   0xe   : > { %s616_s15 = smov (!%p236_p4, %s508_s15), 1 }
   0xf   : > { %s564_s19 = sshll.u32 %s616_s15, 3 }
  0x10   : > { %s242_s22 = scalar_lea.vmem %s606_s0, %s564_s19  ;;  %s246_s25 = scalar_lea.vmem %s607_s1, %s564_s19 }
  0x11   : > { %v258_v1 = vld [vmem:[%s242_s22] sm:$0xff]  ;;  %s253_s30 = scalar_lea.vmem %s609_s3, %s564_s19  ;;  %s257_s7 = scalar_lea.vmem %s610_s4, %s564_s19 }
  0x12   : > { %v271_v2 = vsel %vm270_vm0, %v258_v1, -inf  ;;  %v575_v3 = vld [vmem:[%s246_s25] sm:$0xff]  ;;  %v269_v16 = vmul.f32 %v460_v12, %v258_v1 }
  0x13   : > { %272 = vmax.xlane.f32.xlu0 %v271_v2  ;;  %284 = vperm.xlu1 %488, %v575_v3   ;;  %vm305_vm4 = vcmp.eq.s32.totalorder %v575_v3, 3 }
  0x14   : > { %v298_v22 = vsel %vm270_vm0, %v269_v16, 0.0 }
  0x92   : > { %v285_v7 = vpop.permute.xlu1 %284 }
  0x93   : > { %vm286_vm2 = vcmp.eq.s32.totalorder %v261_v5, %v285_v7 }
  0x94   : > { %v291_v15 = vsel %vm286_vm2, %v460_v12, 0.0  ;;  %v287_v18 = vsel %vm286_vm2, %v269_v16, 0.0 }
  0x95   : > { %v292_v17 = vsel %vm270_vm0, %v291_v15, 0.0  ;;  %v288_v19 = vsel %vm270_vm0, %v287_v18, 0.0 }
  0xa0   : > { %v273_v6 = vpop.xlane.xlu0 %272 }
  0xa1   : > { %v274_v8 = vsub.f32 %v258_v1, %v273_v6  ;;  %vm310_vm1 = vcmp.eq.f32.partialorder %v258_v1, %v273_v6 }
  0xa2   : > { %v311_v9 = vsel %vm310_vm1, %v261_v5, 32 }
  0xa3   : > { %v275_v10 = vmul.f32 1.442695, %v274_v8  ;;  %v312_v11 = vsel %vm270_vm0, %v311_v9, 2147483647 }
  0xa4   : > { %v314_v13 = vshra.s32 %v312_v11, 16  ;;  %v313_v23 = vand.u32 65535, %v312_v11 }
  0xa5   : > { %490 = vpow2.f32 %v275_v10 }
  0xa6   : > { %v316_v14 = vcvt.s32.f32 %v314_v13  ;;  %v315_v25 = vcvt.s32.f32 %v313_v23 }
  0xa8   : > { %317 = vmin.xlane.f32.xlu0 %v316_v14 }
  0xac   : > { %293 = vadd.xlane.f32.xlu0 %v292_v17 }
  0xaf   : > { %v491_v20 = vpop.eup %490 }
  0xb0   : > { %v277_v21 = vsel %vm270_vm0, %v491_v20, 0.0  ;;  %289 = vadd.xlane.f32.xlu0 %v288_v19 }
  0xb1   : > { %278 = vadd.xlane.f32.xlu1 %v277_v21 }
  0xb4   : > { %299 = vadd.xlane.f32.xlu0 %v298_v22 }
 0x135   : > { %v318_v24 = vpop.xlane.xlu0 %317 }
 0x136   : > { %vm319_vm3 = vcmp.eq.f32.partialorder %v316_v14, %v318_v24  ;;  %v324_v43 = vcvt.f32.s32 %v318_v24 }
 0x137   : > { %v320_v26 = vsel %vm319_vm3, %v315_v25, inf }
 0x138   : > { %321 = vmin.xlane.f32.xlu0 %v320_v26  ;;  %v325_v45 = vshll.u32 %v324_v43, 16 }
 0x139   : > { %v294_v28 = vpop.xlane.xlu0 %293 }
 0x13d   : > { %v290_v29 = vpop.xlane.xlu0 %289 }
 0x13e   : > { %v279_v27 = vpop.xlane.xlu1 %278 }
 0x13f   : > { %492 = vlog2.f32 %v279_v27 }
 0x141   : > { %v300_v33 = vpop.xlane.xlu0 %299 }
 0x149   : > { %v493_v30 = vpop.eup %492 }
 0x14a   : > { %v281_v31 = vmul.f32 0.6931472, %v493_v30 }
 0x14c   : > { %v282_v32 = vadd.f32 %v281_v31, %v273_v6 }
 0x14e   : > { %v295_v34 = vmul.f32 %v294_v28, %v282_v32  ;;  %v301_v35 = vmul.f32 56.8, %v282_v32 }
 0x150   : > { %v296_v36 = vsub.f32 %v290_v29, %v295_v34  ;;  %v302_v37 = vsub.f32 %v300_v33, %v301_v35 }
 0x152   : > { %v297_v38 = vmul.f32 -0.8967742, %v296_v36  ;;  %v303_v39 = vmul.f32 -0.0032258064, %v302_v37  ;;  %v306_v40 = vsub.f32 0.0, %v296_v36 }
 0x154   : > { %v304_v41 = vadd.f32 %v303_v39, %v297_v38 }
 0x156   : > { %v307_v42 = vsel %vm305_vm4, %v306_v40, %v304_v41 }
 0x157   : > { %309 = vst.msk [vmem:[%s253_s30] sm:$0xff] %vm308_vm5, %v307_v42 }
 0x1c5   : > { %v322_v44 = vpop.xlane.xlu0 %321 }
 0x1c6   : > { %v323_v46 = vcvt.f32.s32 %v322_v44 }
 0x1c8   : > { %v326_v47 = vadd.s32 %v325_v45, %v323_v46 }
 0x1ca   : > { %vm327_vm6 = vcmp.eq.s32.totalorder %v326_v47, %v575_v3 }
 0x1cb   : > { %v328_v48 = vsel %vm327_vm6, 1, %v518_v0 }
 0x1cc   : > { %329 = vst.msk [vmem:[%s257_s7] sm:$0xff] %vm308_vm5, %v328_v48 }
 0x1cd PF: > { %s15_s17 = sadd.s32 1, %s516_s17   ;;  %s611_s15 = smov %s512_s16 }
 0x1ce   : > { %p12_p5 = scmp.ge.s32.totalorder %s15_s17, 4   ;;  %s612_s16 = smov %s614_s18 }
 0x1d0   :  { %14 = sbr.rel (!%p12_p5) target bundleno = 2 (0x2), region = 80 }

</bundles_post_ra>
